<compile_context>
chip_gen: v7x
topology: tpu7x:2x2x1
jax: 0.10.0
libtpu: 0.0.40
codegen_flags: <defaults>
</compile_context>

<pallas_src>
import math
from functools import partial

import jax
import jax.numpy as jnp
from jax.experimental import pallas as pl
from jax.experimental.pallas import tpu as pltpu


def _round_up(n, m):
    return ((n + m - 1) // m) * m


def _default_act_dtype():
    """bf16 activations on v6e/v7x; f32 on v5e (its VPU has no bf16 path)."""
    try:
        kind = jax.devices()[0].device_kind.lower()
    except Exception:
        return jnp.bfloat16
    if "v5e" in kind or "v5 lite" in kind or "v5lite" in kind:
        return jnp.float32
    return jnp.bfloat16


def _vmem_capacity_bytes():
    try:
        return int(pltpu.get_tpu_info().vmem_capacity_bytes)
    except Exception:
        return 128 << 20  # v5e/v6e physical


def _mlp_kernel(*refs, act_dtype):
    """refs = (x_ref, w_0, ..., w_{H-1}, w_last_row, bias_pack, out_ref).

    w_0..w_{H-1}  : bf16 (in_i, out_i_padded) hidden Linear weights (ReLU after)
    w_last_row    : f32  (1, d_last_padded)   final Linear weight, stored as row
    bias_pack     : f32  (H+1, max_out_pad)   biases, row i = bias of layer i
    out_ref       : f32  (tile_b, 1)          output written directly
    """
    x_ref = refs[0]
    out_ref = refs[-1]
    bias_ref = refs[-2]
    w_last_ref = refs[-3]
    w_refs = refs[1:-3]

    # Cast x once to bf16 (first matmul consumes bf16 anyway).
    h = x_ref[...].astype(jnp.bfloat16)

    # Hidden layers: bf16 MXU matmul, f32 accumulate, f32 bias add + ReLU,
    # activations carried in act_dtype between layers.
    # Widths are padded to multiples of 128 -> lane-aligned bias slices.
    for li, w_ref in enumerate(w_refs):
        dout = w_ref.shape[1]  # multiple of 128
        acc = jnp.dot(
            h.astype(jnp.bfloat16),
            w_ref[...],
            preferred_element_type=jnp.float32,
        )
        h = jnp.maximum(acc + bias_ref[li : li + 1, :dout], 0.0).astype(act_dtype)

    # Final (out_features == 1) layer on VPU/XLU: multiply + cross-lane reduce
    # (avoids a 1-wide MXU matmul).
    nh = len(w_refs)
    y = jnp.sum(h.astype(jnp.float32) * w_last_ref[...], axis=-1, keepdims=True)
    y = y + bias_ref[nh : nh + 1, 0:1]  # (tile_b, 1)

    out_ref[...] = y.astype(out_ref.dtype)  # direct (tile_b, 1) store


def dynamic_regression_forward(x, weights, biases, *, tile_b=None, act_dtype=None):
    """Full MLP forward in one Pallas kernel.

    x:       (batch, input_size) float32 or bfloat16
    weights: list of (in_i, out_i) float32 arrays, last one has out == 1
    biases:  list of (out_i,) float32 arrays
    returns: (batch, 1) float32
    """
    batch, input_size = x.shape
    num_total = len(weights)
    num_hidden = num_total - 1
    assert weights[-1].shape[-1] == 1, "final layer must have out_features == 1"

    if act_dtype is None:
        act_dtype = _default_act_dtype()

    # ---- parameter packing (zero-pad hidden widths to 128-lane tiles) -------
    pad_outs = [
        max(128, _round_up(int(w.shape[1]), 128)) for w in weights[:num_hidden]
    ]
    w_hidden = []
    in_dim = input_size
    for i in range(num_hidden):
        di, do = int(weights[i].shape[0]), int(weights[i].shape[1])
        wp = jnp.zeros((in_dim, pad_outs[i]), jnp.float32).at[:di, :do].set(weights[i])
        w_hidden.append(wp.astype(jnp.bfloat16))
        in_dim = pad_outs[i]

    d_last = int(weights[-1].shape[0])
    last_in = in_dim  # padded width of the last hidden layer (or input_size)
    w_last_row = (
        jnp.zeros((1, last_in), jnp.float32).at[0, :d_last].set(jnp.ravel(weights[-1]))
    )

    bias_cols = max(pad_outs) if pad_outs else 128
    bias_rows = []
    for b in biases:
        bf = jnp.ravel(b).astype(jnp.float32)
        bias_rows.append(jnp.pad(bf, (0, bias_cols - bf.shape[0])))
    bias_pack = jnp.stack(bias_rows, axis=0)  # (num_total, bias_cols) f32

    # ---- tiling --------------------------------------------------------------
    if tile_b is None:
        tile_b = min(1024, _round_up(batch, 8))
        # v7x megacore: keep >= 2 grid steps when the batch is large enough.
        if batch >= 512 and pl.cdiv(batch, tile_b) < 2:
            tile_b = _round_up(pl.cdiv(batch, 2), 8)
    grid = (pl.cdiv(batch, tile_b),)

    x_spec = pl.BlockSpec((tile_b, input_size), lambda i: (i, 0))
    out_spec = pl.BlockSpec((tile_b, 1), lambda i: (i, 0))
    const2d = lambda i: (0, 0)  # parameters: resident, never re-fetched

    # ---- cost / VMEM budget --------------------------------------------------
    param_bytes = sum(
        int(w.size) * w.dtype.itemsize for w in (*w_hidden, w_last_row, bias_pack)
    )
    flops = 2 * batch * (
        sum(int(w.shape[0]) * int(w.shape[1]) for w in w_hidden) + last_in
    )
    bytes_accessed = int(x.size) * x.dtype.itemsize + param_bytes + batch * 4
    cost = pl.CostEstimate(
        flops=int(flops), transcendentals=0, bytes_accessed=int(bytes_accessed)
    )

    widest = max([input_size, last_in] + pad_outs)
    act_bytes = tile_b * widest * (4 + 2)  # f32 acc + bf16/f32 activation copies
    io_bytes = 2 * tile_b * (input_size * x.dtype.itemsize + 4)  # x/out dbl buffers
    vmem_need = param_bytes + act_bytes + io_bytes + (4 << 20)
    vmem_cap = _vmem_capacity_bytes()
    vmem_limit = int(min(max(vmem_need, 32 << 20), vmem_cap - (8 << 20)))

    compiler_params = pltpu.CompilerParams(
        dimension_semantics=("parallel",),  # megacore sharding on v7x
        vmem_limit_bytes=vmem_limit,
    )

    kernel = partial(_mlp_kernel, act_dtype=act_dtype)
    out_shape = jax.ShapeDtypeStruct((batch, 1), jnp.float32)

    def _param_spec(shape, single_buffer):
        if single_buffer:
            # Constant index_map -> one resident buffer is enough; halves
            # parameter VMEM vs the default double-buffered pipeline.
            return pl.BlockSpec(shape, const2d, pipeline_mode=pl.Buffered(1))
        return pl.BlockSpec(shape, const2d)

    def _run(single_buffer):
        in_specs = [x_spec]
        in_specs += [_param_spec(tuple(w.shape), single_buffer) for w in w_hidden]
        in_specs += [
            _param_spec(tuple(w_last_row.shape), single_buffer),
            _param_spec(tuple(bias_pack.shape), single_buffer),
        ]
        return pl.pallas_call(
            kernel,
            out_shape=out_shape,
            grid=grid,
            in_specs=in_specs,
            out_specs=out_spec,
            compiler_params=compiler_params,
            cost_estimate=cost,
        )(x, *w_hidden, w_last_row, bias_pack)

    # TODO(synk): for very large input_size (resident bf16 first-layer weight
    # approaching v7x's 64 MiB VMEM, e.g. input_size >= 8192), K-tile the first
    # layer's contraction (extra grid axis + f32 VMEM accumulator with pl.when
    # init/finalize) instead of keeping the full weight resident.
    try:
        return _run(single_buffer=True)
    except Exception:
        # Fallback if pipeline_mode=pl.Buffered(1) is unsupported in this JAX.
        return _run(single_buffer=False)


def init_params(key, input_size, num_layers):
    """Matches the PyTorch layer shapes: num_layers x Linear(c, max(c//2,1)) + Linear(c, 1).
    PyTorch-default-style uniform(-1/sqrt(fan_in), 1/sqrt(fan_in)); weights stored (in, out)."""
    dims = []
    current = input_size
    for _ in range(num_layers):
        out = max(current // 2, 1)
        dims.append((current, out))
        current = out
    dims.append((current, 1))

    weights, biases = [], []
    for fan_in, fan_out in dims:
        key, kw, kb = jax.random.split(key, 3)
        bound = 1.0 / math.sqrt(float(fan_in))
        weights.append(
            jax.random.uniform(kw, (fan_in, fan_out), jnp.float32, -bound, bound)
        )
        biases.append(jax.random.uniform(kb, (fan_out,), jnp.float32, -bound, bound))
    return weights, biases


def reference_forward_f32(x, weights, biases):
    h = x
    for i, (w, b) in enumerate(zip(weights, biases)):
        h = h @ w + b.reshape(1, -1)
        if i < len(weights) - 1:
            h = jnp.maximum(h, 0.0)
    return h


def reference_forward_matched(x, weights, biases, act_dtype=None):
    """Same dtype strategy as the kernel (bf16 matmul inputs, f32 accumulate,
    act_dtype activations between layers, VPU-style final layer)."""
    if act_dtype is None:
        act_dtype = _default_act_dtype()
    h = x.astype(jnp.bfloat16)
    n = len(weights)
    for i in range(n - 1):
        acc = jnp.dot(
            h.astype(jnp.bfloat16),
            weights[i].astype(jnp.bfloat16),
            preferred_element_type=jnp.float32,
        )
        h = jnp.maximum(acc + biases[i].reshape(1, -1), 0.0).astype(act_dtype)
    w_row = weights[-1].reshape(1, -1).astype(jnp.float32)
    return (
        jnp.sum(h.astype(jnp.float32) * w_row, axis=-1, keepdims=True)
        + biases[-1].reshape(1, 1)
    )


if __name__ == "__main__":
    input_size = 32
    num_layers = 3
    batch = 8

    key = jax.random.PRNGKey(0)
    key, kx = jax.random.split(key)
    x = jax.random.normal(kx, (batch, input_size), jnp.float32)

    weights, biases = init_params(key, input_size, num_layers)

    out = dynamic_regression_forward(x, weights, biases)
    out = jax.block_until_ready(out)
    assert out.shape == (batch, 1)

    ref_matched = reference_forward_matched(x, weights, biases)
    ref_f32 = reference_forward_f32(x, weights, biases)
    assert jnp.allclose(out, ref_matched, atol=1e-3, rtol=1e-3), "mismatch vs matched ref"
    assert jnp.allclose(out, ref_f32, atol=5e-2, rtol=5e-2), "mismatch vs f32 ref"

    print("KERNEL_OK")
</pallas_src>

<mosaic_0001>
module attributes {stable_mosaic.version = 11 : i64} {
  func.func @_mlp_kernel(%arg0: i32, %arg1: memref<8x32xf32, #tpu.memory_space<vmem>>, %arg2: memref<32x128xbf16, #tpu.memory_space<vmem>>, %arg3: memref<128x128xbf16, #tpu.memory_space<vmem>>, %arg4: memref<128x128xbf16, #tpu.memory_space<vmem>>, %arg5: memref<1x128xf32, #tpu.memory_space<vmem>>, %arg6: memref<4x128xf32, #tpu.memory_space<vmem>>, %arg7: memref<8x1xf32, #tpu.memory_space<vmem>>) attributes {dimension_semantics = [#tpu.dimension_semantics<parallel>], iteration_bounds = array<i64: 1>, scalar_prefetch = 0 : i64, scratch_operands = 0 : i64, tpu.core_type = #tpu.core_type<tc>, window_params = [{transform_indices = @transform_0, window_bounds = array<i64: 8, 32>}, {pipeline_mode = #tpu.pipeline_mode<synchronous>, transform_indices = @transform_1, window_bounds = array<i64: 32, 128>}, {pipeline_mode = #tpu.pipeline_mode<synchronous>, transform_indices = @transform_2, window_bounds = array<i64: 128, 128>}, {pipeline_mode = #tpu.pipeline_mode<synchronous>, transform_indices = @transform_3, window_bounds = array<i64: 128, 128>}, {pipeline_mode = #tpu.pipeline_mode<synchronous>, transform_indices = @transform_4, window_bounds = array<i64: 1, 128>}, {pipeline_mode = #tpu.pipeline_mode<synchronous>, transform_indices = @transform_5, window_bounds = array<i64: 4, 128>}, {transform_indices = @transform_6, window_bounds = array<i64: 8, 1>}]} {
    %c0 = arith.constant 0 : index
    %c0_0 = arith.constant 0 : index
    %0 = vector.load %arg1[%c0, %c0_0] : memref<8x32xf32, #tpu.memory_space<vmem>>, vector<8x32xf32>
    %1 = arith.truncf %0 : vector<8x32xf32> to vector<8x32xbf16>
    %c0_1 = arith.constant 0 : index
    %c0_2 = arith.constant 0 : index
    %2 = vector.load %arg2[%c0_1, %c0_2] : memref<32x128xbf16, #tpu.memory_space<vmem>>, vector<32x128xbf16>
    %cst = arith.constant dense<0.000000e+00> : vector<8x128xf32>
    %3 = tpu.matmul %1, %2, %cst {dimension_numbers = #tpu.dot_dimension_numbers<[1], [0], [0], [1], [0, 0, 1, 1], [], []>} : vector<8x32xbf16>, vector<32x128xbf16>, vector<8x128xf32> -> vector<8x128xf32>
    %c0_3 = arith.constant 0 : index
    %c0_4 = arith.constant 0 : index
    %4 = vector.load %arg6[%c0_3, %c0_4] : memref<4x128xf32, #tpu.memory_space<vmem>>, vector<1x128xf32>
    %5 = vector.broadcast %4 : vector<1x128xf32> to vector<8x128xf32>
    %6 = arith.addf %3, %5 : vector<8x128xf32>
    %cst_5 = arith.constant 0.000000e+00 : f32
    %7 = vector.broadcast %cst_5 : f32 to vector<8x128xf32>
    %8 = arith.maximumf %6, %7 : vector<8x128xf32>
    %9 = arith.truncf %8 : vector<8x128xf32> to vector<8x128xbf16>
    %c0_6 = arith.constant 0 : index
    %c0_7 = arith.constant 0 : index
    %10 = vector.load %arg3[%c0_6, %c0_7] : memref<128x128xbf16, #tpu.memory_space<vmem>>, vector<128x128xbf16>
    %cst_8 = arith.constant dense<0.000000e+00> : vector<8x128xf32>
    %11 = tpu.matmul %9, %10, %cst_8 {dimension_numbers = #tpu.dot_dimension_numbers<[1], [0], [0], [1], [0, 0, 1, 1], [], []>} : vector<8x128xbf16>, vector<128x128xbf16>, vector<8x128xf32> -> vector<8x128xf32>
    %c1 = arith.constant 1 : index
    %c0_9 = arith.constant 0 : index
    %12 = vector.load %arg6[%c1, %c0_9] : memref<4x128xf32, #tpu.memory_space<vmem>>, vector<1x128xf32>
    %13 = vector.broadcast %12 : vector<1x128xf32> to vector<8x128xf32>
    %14 = arith.addf %11, %13 : vector<8x128xf32>
    %cst_10 = arith.constant 0.000000e+00 : f32
    %15 = vector.broadcast %cst_10 : f32 to vector<8x128xf32>
    %16 = arith.maximumf %14, %15 : vector<8x128xf32>
    %17 = arith.truncf %16 : vector<8x128xf32> to vector<8x128xbf16>
    %c0_11 = arith.constant 0 : index
    %c0_12 = arith.constant 0 : index
    %18 = vector.load %arg4[%c0_11, %c0_12] : memref<128x128xbf16, #tpu.memory_space<vmem>>, vector<128x128xbf16>
    %cst_13 = arith.constant dense<0.000000e+00> : vector<8x128xf32>
    %19 = tpu.matmul %17, %18, %cst_13 {dimension_numbers = #tpu.dot_dimension_numbers<[1], [0], [0], [1], [0, 0, 1, 1], [], []>} : vector<8x128xbf16>, vector<128x128xbf16>, vector<8x128xf32> -> vector<8x128xf32>
    %c2 = arith.constant 2 : index
    %c0_14 = arith.constant 0 : index
    %20 = vector.load %arg6[%c2, %c0_14] : memref<4x128xf32, #tpu.memory_space<vmem>>, vector<1x128xf32>
    %21 = vector.broadcast %20 : vector<1x128xf32> to vector<8x128xf32>
    %22 = arith.addf %19, %21 : vector<8x128xf32>
    %cst_15 = arith.constant 0.000000e+00 : f32
    %23 = vector.broadcast %cst_15 : f32 to vector<8x128xf32>
    %24 = arith.maximumf %22, %23 : vector<8x128xf32>
    %25 = arith.truncf %24 : vector<8x128xf32> to vector<8x128xbf16>
    %26 = arith.extf %25 : vector<8x128xbf16> to vector<8x128xf32>
    %c0_16 = arith.constant 0 : index
    %c0_17 = arith.constant 0 : index
    %27 = vector.load %arg5[%c0_16, %c0_17] : memref<1x128xf32, #tpu.memory_space<vmem>>, vector<1x128xf32>
    %28 = vector.broadcast %27 : vector<1x128xf32> to vector<8x128xf32>
    %29 = arith.mulf %26, %28 : vector<8x128xf32>
    %cst_18 = arith.constant dense<0.000000e+00> : vector<8xf32>
    %30 = vector.multi_reduction <add>, %29, %cst_18 [1] : vector<8x128xf32> to vector<8xf32>
    %31 = vector.shape_cast %30 : vector<8xf32> to vector<8x1xf32>
    %c3 = arith.constant 3 : index
    %c0_19 = arith.constant 0 : index
    %32 = vector.load %arg6[%c3, %c0_19] : memref<4x128xf32, #tpu.memory_space<vmem>>, vector<1x1xf32>
    %33 = vector.broadcast %32 : vector<1x1xf32> to vector<8x1xf32>
    %34 = arith.addf %31, %33 : vector<8x1xf32>
    %c0_20 = arith.constant 0 : index
    %c0_21 = arith.constant 0 : index
    %35 = vector.load %arg7[%c0_20, %c0_21] : memref<8x1xf32, #tpu.memory_space<vmem>>, vector<8x1xf32>
    tpu.vector_store %arg7[%c0_20, %c0_21], %34 {strides = array<i32>} : memref<8x1xf32, #tpu.memory_space<vmem>>, vector<8x1xf32>,
    return
  }
  func.func @transform_0(%arg0: i32) -> (i32, i32) {
    %c0_i32 = arith.constant 0 : i32
    %c0_i32_0 = arith.constant 0 : i32
    return %arg0, %c0_i32 : i32, i32
  }
  func.func @transform_1(%arg0: i32) -> (i32, i32) {
    %c0_i32 = arith.constant 0 : i32
    %c0_i32_0 = arith.constant 0 : i32
    %c0_i32_1 = arith.constant 0 : i32
    return %c0_i32, %c0_i32_0 : i32, i32
  }
  func.func @transform_2(%arg0: i32) -> (i32, i32) {
    %c0_i32 = arith.constant 0 : i32
    %c0_i32_0 = arith.constant 0 : i32
    %c0_i32_1 = arith.constant 0 : i32
    return %c0_i32, %c0_i32_0 : i32, i32
  }
  func.func @transform_3(%arg0: i32) -> (i32, i32) {
    %c0_i32 = arith.constant 0 : i32
    %c0_i32_0 = arith.constant 0 : i32
    %c0_i32_1 = arith.constant 0 : i32
    return %c0_i32, %c0_i32_0 : i32, i32
  }
  func.func @transform_4(%arg0: i32) -> (i32, i32) {
    %c0_i32 = arith.constant 0 : i32
    %c0_i32_0 = arith.constant 0 : i32
    %c0_i32_1 = arith.constant 0 : i32
    return %c0_i32, %c0_i32_0 : i32, i32
  }
  func.func @transform_5(%arg0: i32) -> (i32, i32) {
    %c0_i32 = arith.constant 0 : i32
    %c0_i32_0 = arith.constant 0 : i32
    %c0_i32_1 = arith.constant 0 : i32
    return %c0_i32, %c0_i32_0 : i32, i32
  }
  func.func @transform_6(%arg0: i32) -> (i32, i32) {
    %c0_i32 = arith.constant 0 : i32
    %c0_i32_0 = arith.constant 0 : i32
    return %arg0, %c0_i32 : i32, i32
  }
}

module attributes {stable_mosaic.version = 11 : i64} {
  func.func @_mlp_kernel(%arg0: i32, %arg1: memref<8x32xf32, #tpu.memory_space<vmem>>, %arg2: memref<32x128xbf16, #tpu.memory_space<vmem>>, %arg3: memref<128x128xbf16, #tpu.memory_space<vmem>>, %arg4: memref<128x128xbf16, #tpu.memory_space<vmem>>, %arg5: memref<1x128xf32, #tpu.memory_space<vmem>>, %arg6: memref<4x128xf32, #tpu.memory_space<vmem>>, %arg7: memref<8x1xf32, #tpu.memory_space<vmem>>) attributes {dimension_semantics = [#tpu.dimension_semantics<parallel>], iteration_bounds = array<i64: 1>, scalar_prefetch = 0 : i64, scratch_operands = 0 : i64, tpu.core_type = #tpu.core_type<tc>, window_params = [{transform_indices = @transform_0, window_bounds = array<i64: 8, 32>}, {pipeline_mode = #tpu.pipeline_mode<synchronous>, transform_indices = @transform_1, window_bounds = array<i64: 32, 128>}, {pipeline_mode = #tpu.pipeline_mode<synchronous>, transform_indices = @transform_2, window_bounds = array<i64: 128, 128>}, {pipeline_mode = #tpu.pipeline_mode<synchronous>, transform_indices = @transform_3, window_bounds = array<i64: 128, 128>}, {pipeline_mode = #tpu.pipeline_mode<synchronous>, transform_indices = @transform_4, window_bounds = array<i64: 1, 128>}, {pipeline_mode = #tpu.pipeline_mode<synchronous>, transform_indices = @transform_5, window_bounds = array<i64: 4, 128>}, {transform_indices = @transform_6, window_bounds = array<i64: 8, 1>}]} {
    %c0 = arith.constant 0 : index
    %c0_0 = arith.constant 0 : index
    %0 = vector.load %arg1[%c0, %c0_0] : memref<8x32xf32, #tpu.memory_space<vmem>>, vector<8x32xf32>
    %1 = arith.truncf %0 : vector<8x32xf32> to vector<8x32xbf16>
    %c0_1 = arith.constant 0 : index
    %c0_2 = arith.constant 0 : index
    %2 = vector.load %arg2[%c0_1, %c0_2] : memref<32x128xbf16, #tpu.memory_space<vmem>>, vector<32x128xbf16>
    %cst = arith.constant dense<0.000000e+00> : vector<8x128xf32>
    %3 = tpu.matmul %1, %2, %cst {dimension_numbers = #tpu.dot_dimension_numbers<[1], [0], [0], [1], [0, 0, 1, 1], [], []>} : vector<8x32xbf16>, vector<32x128xbf16>, vector<8x128xf32> -> vector<8x128xf32>
    %c0_3 = arith.constant 0 : index
    %c0_4 = arith.constant 0 : index
    %4 = vector.load %arg6[%c0_3, %c0_4] : memref<4x128xf32, #tpu.memory_space<vmem>>, vector<1x128xf32>
    %5 = vector.broadcast %4 : vector<1x128xf32> to vector<8x128xf32>
    %6 = arith.addf %3, %5 : vector<8x128xf32>
    %cst_5 = arith.constant 0.000000e+00 : f32
    %7 = vector.broadcast %cst_5 : f32 to vector<8x128xf32>
    %8 = arith.maximumf %6, %7 : vector<8x128xf32>
    %9 = arith.truncf %8 : vector<8x128xf32> to vector<8x128xbf16>
    %c0_6 = arith.constant 0 : index
    %c0_7 = arith.constant 0 : index
    %10 = vector.load %arg3[%c0_6, %c0_7] : memref<128x128xbf16, #tpu.memory_space<vmem>>, vector<128x128xbf16>
    %cst_8 = arith.constant dense<0.000000e+00> : vector<8x128xf32>
    %11 = tpu.matmul %9, %10, %cst_8 {dimension_numbers = #tpu.dot_dimension_numbers<[1], [0], [0], [1], [0, 0, 1, 1], [], []>} : vector<8x128xbf16>, vector<128x128xbf16>, vector<8x128xf32> -> vector<8x128xf32>
    %c1 = arith.constant 1 : index
    %c0_9 = arith.constant 0 : index
    %12 = vector.load %arg6[%c1, %c0_9] : memref<4x128xf32, #tpu.memory_space<vmem>>, vector<1x128xf32>
    %13 = vector.broadcast %12 : vector<1x128xf32> to vector<8x128xf32>
    %14 = arith.addf %11, %13 : vector<8x128xf32>
    %cst_10 = arith.constant 0.000000e+00 : f32
    %15 = vector.broadcast %cst_10 : f32 to vector<8x128xf32>
    %16 = arith.maximumf %14, %15 : vector<8x128xf32>
    %17 = arith.truncf %16 : vector<8x128xf32> to vector<8x128xbf16>
    %c0_11 = arith.constant 0 : index
    %c0_12 = arith.constant 0 : index
    %18 = vector.load %arg4[%c0_11, %c0_12] : memref<128x128xbf16, #tpu.memory_space<vmem>>, vector<128x128xbf16>
    %cst_13 = arith.constant dense<0.000000e+00> : vector<8x128xf32>
    %19 = tpu.matmul %17, %18, %cst_13 {dimension_numbers = #tpu.dot_dimension_numbers<[1], [0], [0], [1], [0, 0, 1, 1], [], []>} : vector<8x128xbf16>, vector<128x128xbf16>, vector<8x128xf32> -> vector<8x128xf32>
    %c2 = arith.constant 2 : index
    %c0_14 = arith.constant 0 : index
    %20 = vector.load %arg6[%c2, %c0_14] : memref<4x128xf32, #tpu.memory_space<vmem>>, vector<1x128xf32>
    %21 = vector.broadcast %20 : vector<1x128xf32> to vector<8x128xf32>
    %22 = arith.addf %19, %21 : vector<8x128xf32>
    %cst_15 = arith.constant 0.000000e+00 : f32
    %23 = vector.broadcast %cst_15 : f32 to vector<8x128xf32>
    %24 = arith.maximumf %22, %23 : vector<8x128xf32>
    %25 = arith.truncf %24 : vector<8x128xf32> to vector<8x128xbf16>
    %26 = arith.extf %25 : vector<8x128xbf16> to vector<8x128xf32>
    %c0_16 = arith.constant 0 : index
    %c0_17 = arith.constant 0 : index
    %27 = vector.load %arg5[%c0_16, %c0_17] : memref<1x128xf32, #tpu.memory_space<vmem>>, vector<1x128xf32>
    %28 = vector.broadcast %27 : vector<1x128xf32> to vector<8x128xf32>
    %29 = arith.mulf %26, %28 : vector<8x128xf32>
    %cst_18 = arith.constant dense<0.000000e+00> : vector<8xf32>
    %30 = vector.multi_reduction <add>, %29, %cst_18 [1] : vector<8x128xf32> to vector<8xf32>
    %31 = vector.shape_cast %30 : vector<8xf32> to vector<8x1xf32>
    %c3 = arith.constant 3 : index
    %c0_19 = arith.constant 0 : index
    %32 = vector.load %arg6[%c3, %c0_19] : memref<4x128xf32, #tpu.memory_space<vmem>>, vector<1x1xf32>
    %33 = vector.broadcast %32 : vector<1x1xf32> to vector<8x1xf32>
    %34 = arith.addf %31, %33 : vector<8x1xf32>
    %c0_20 = arith.constant 0 : index
    %c0_21 = arith.constant 0 : index
    %35 = vector.load %arg7[%c0_20, %c0_21] : memref<8x1xf32, #tpu.memory_space<vmem>>, vector<8x1xf32>
    tpu.vector_store %arg7[%c0_20, %c0_21], %34 {strides = array<i32>} : memref<8x1xf32, #tpu.memory_space<vmem>>, vector<8x1xf32>,
    return
  }
  func.func @transform_0(%arg0: i32) -> (i32, i32) {
    %c0_i32 = arith.constant 0 : i32
    %c0_i32_0 = arith.constant 0 : i32
    return %arg0, %c0_i32 : i32, i32
  }
  func.func @transform_1(%arg0: i32) -> (i32, i32) {
    %c0_i32 = arith.constant 0 : i32
    %c0_i32_0 = arith.constant 0 : i32
    %c0_i32_1 = arith.constant 0 : i32
    return %c0_i32, %c0_i32_0 : i32, i32
  }
  func.func @transform_2(%arg0: i32) -> (i32, i32) {
    %c0_i32 = arith.constant 0 : i32
    %c0_i32_0 = arith.constant 0 : i32
    %c0_i32_1 = arith.constant 0 : i32
    return %c0_i32, %c0_i32_0 : i32, i32
  }
  func.func @transform_3(%arg0: i32) -> (i32, i32) {
    %c0_i32 = arith.constant 0 : i32
    %c0_i32_0 = arith.constant 0 : i32
    %c0_i32_1 = arith.constant 0 : i32
    return %c0_i32, %c0_i32_0 : i32, i32
  }
  func.func @transform_4(%arg0: i32) -> (i32, i32) {
    %c0_i32 = arith.constant 0 : i32
    %c0_i32_0 = arith.constant 0 : i32
    %c0_i32_1 = arith.constant 0 : i32
    return %c0_i32, %c0_i32_0 : i32, i32
  }
  func.func @transform_5(%arg0: i32) -> (i32, i32) {
    %c0_i32 = arith.constant 0 : i32
    %c0_i32_0 = arith.constant 0 : i32
    %c0_i32_1 = arith.constant 0 : i32
    return %c0_i32, %c0_i32_0 : i32, i32
  }
  func.func @transform_6(%arg0: i32) -> (i32, i32) {
    %c0_i32 = arith.constant 0 : i32
    %c0_i32_0 = arith.constant 0 : i32
    return %arg0, %c0_i32 : i32, i32
  }
}

</mosaic_0001>

<bundles_post_ra>
// kernel: tpu_custom_call.1
= control target key start
LH: loop header
LB: loop body
LE: loop exit
PB: predicated region body
PF: predicated region fallthrough
CT: control target
= control target key end

     0   :  { %11 = vsyncpa [#allocation3], 0  ;;  %s749_s0 = inlined_call_operand.hbm [shape: f32[8,32], index: 0, kind: input, shape index: {}]   ;;  %s750_s1 = inlined_call_operand.hbm [shape: bf16[32,128], index: 1, kind: input, shape index: {}]   ;;  %s751_s2 = inlined_call_operand.hbm [shape: bf16[128,128], index: 2, kind: input, shape index: {}]   ;;  %s752_s3 = inlined_call_operand.hbm [shape: bf16[128,128], index: 3, kind: input, shape index: {}]   ;;  %s753_s4 = inlined_call_operand.vmem [shape: f32[1,128], index: 4, kind: input, shape index: {}]   ;;  %s754_s5 = inlined_call_operand.vmem [shape: f32[4,128], index: 5, kind: input, shape index: {}]   ;;  %s755_s6 = inlined_call_operand.vmem [shape: f32[8,1], index: 6, kind: output, shape index: {}]  }
   0x1   :  { %12 = vsyncpa [#allocation5], 0 }
   0x2   :  { %13 = vsyncpa [#allocation8], 0  ;;  %s607_s21 = smov [#allocation4]   ;;  %s513_s25 = scalar_lea.hbm %s750_s1, 256 }
   0x3   :  { %s29_s22 = sshll.u32 %s607_s21, 4  ;;  %p514_p0 = scmp.ne.s32.totalorder %s750_s1, %s513_s25  ;;  %s30_s22 = int_to_ptr.vmem [resolvable:$true] %s29_s22 }
   0x4   :  { %p517_p1 = scmp.lt.u32.totalorder %s513_s25, %s750_s1 }
   0x6   :  { %p519_p2 = pnand %p517_p1, %p514_p0 }
   0x8   :  { %522 = shalt.err (!%p519_p2)
}
   0x9   :  { %s523_s30 = scalar_lea.vmem %s30_s22, 256  ;;  %p528_p4 = scmp.lt.s32.totalorder %s30_s22, %s30_s22 }
   0xa   :  { %p524_p3 = scmp.ne.s32.totalorder %s30_s22, %s523_s30  ;;  %p529_p5 = scmp.lt.s32.totalorder %s523_s30, %s523_s30 }
   0xc   :  { %p530_p6 = por %p529_p5, %p528_p4 }
   0xe   :  { %p531_p7 = pnand %p530_p6, %p524_p3 }
  0x10   :  { %534 = shalt.err (!%p531_p7)
}
  0x11   :  { %s608_s7 = smov 64   ;;  %s609_s8 = smov 4  }
  0x12   :  { %35 = dma.hbm_to_vmem [thread:$0]  %s750_s1, 256, %s30_s22, [#allocation5], %s608_s7, %s608_s7, %s609_s8  }
  0x13   :  { %s610_s11 = smov [#allocation2]   ;;  %s611_s13 = smov [#allocation6]  }
  0x14   :  { %s20_s12 = sshll.u32 %s610_s11, 4  ;;  %s41_s14 = sshll.u32 %s611_s13, 4  ;;  %s21_s12 = int_to_ptr.vmem [resolvable:$true] %s20_s12  ;;  %s42_s14 = int_to_ptr.vmem [resolvable:$true] %s41_s14 }
  0x15   :  { %s535_s17 = scalar_lea.hbm %s749_s0, 128 }
  0x16   :  { %p536_p8 = scmp.ne.s32.totalorder %s749_s0, %s535_s17  ;;  %p539_p9 = scmp.lt.u32.totalorder %s535_s17, %s749_s0 }
  0x18   :  { %p541_p10 = pnand %p539_p9, %p536_p8 }
  0x1a   :  { %544 = shalt.err (!%p541_p10)
}
  0x1b   :  { %s545_s1 = scalar_lea.vmem %s21_s12, 128  ;;  %p550_p12 = scmp.lt.s32.totalorder %s21_s12, %s21_s12 }
  0x1c   :  { %p546_p11 = scmp.ne.s32.totalorder %s21_s12, %s545_s1  ;;  %p551_p13 = scmp.lt.s32.totalorder %s545_s1, %s545_s1 }
  0x1e   :  { %p552_p0 = por %p551_p13, %p550_p12 }
  0x20   :  { %p553_p1 = pnand %p552_p0, %p546_p11 }
  0x22   :  { %556 = shalt.err (!%p553_p1)
}
  0x23   :  { %23 = dma.hbm_to_vmem [thread:$0]  %s749_s0, 128, %s21_s12, [#allocation3]  }
  0x24   :  { %s557_s26 = scalar_lea.hbm %s751_s2, 1024 }
  0x25   :  { %p558_p2 = scmp.ne.s32.totalorder %s751_s2, %s557_s26  ;;  %p561_p3 = scmp.lt.u32.totalorder %s557_s26, %s751_s2 }
  0x27   :  { %p563_p4 = pnand %p561_p3, %p558_p2 }
  0x29   :  { %566 = shalt.err (!%p563_p4)
}
  0x2a   :  { %s567_s9 = scalar_lea.vmem %s42_s14, 1024  ;;  %p572_p6 = scmp.lt.s32.totalorder %s42_s14, %s42_s14 }
  0x2b   :  { %p568_p5 = scmp.ne.s32.totalorder %s42_s14, %s567_s9  ;;  %p573_p7 = scmp.lt.s32.totalorder %s567_s9, %s567_s9 }
  0x2d   :  { %p574_p8 = por %p573_p7, %p572_p6 }
  0x2f   :  { %p575_p9 = pnand %p574_p8, %p568_p5 }
  0x31   :  { %578 = shalt.err (!%p575_p9)
}
  0x32   :  { %47 = dma.hbm_to_vmem [thread:$0]  %s751_s2, 1024, %s42_s14, [#allocation5], %s608_s7, %s608_s7, %s609_s8  }
  0x33   :  { %s612_s11 = smov [#allocation7]   ;;  %s579_s16 = scalar_lea.hbm %s752_s3, 1024 }
  0x34   :  { %s53_s12 = sshll.u32 %s612_s11, 4  ;;  %p580_p10 = scmp.ne.s32.totalorder %s752_s3, %s579_s16  ;;  %s54_s12 = int_to_ptr.vmem [resolvable:$true] %s53_s12 }
  0x35   :  { %p583_p11 = scmp.lt.u32.totalorder %s579_s16, %s752_s3 }
  0x37   :  { %p585_p12 = pnand %p583_p11, %p580_p10 }
  0x39   :  { %588 = shalt.err (!%p585_p12)
}
  0x3a   :  { %s589_s21 = scalar_lea.vmem %s54_s12, 1024  ;;  %p594_p0 = scmp.lt.s32.totalorder %s54_s12, %s54_s12 }
  0x3b   :  { %p590_p13 = scmp.ne.s32.totalorder %s54_s12, %s589_s21  ;;  %p595_p1 = scmp.lt.s32.totalorder %s589_s21, %s589_s21 }
  0x3d   :  { %p596_p2 = por %p595_p1, %p594_p0 }
  0x3f   :  { %p597_p3 = pnand %p596_p2, %p590_p13 }
  0x41   :  { %600 = shalt.err (!%p597_p3)
}
  0x42   :  { %59 = dma.hbm_to_vmem [thread:$0]  %s752_s3, 1024, %s54_s12, [#allocation8], %s608_s7, %s608_s7, %s609_s8  }
  0x43   :  { %601 = dma.done.wait [#allocation3], 128  }
  0x44   :  { %602 = vsyncadd [#allocation3], 4294967168 }
  0x45   :  { %603 = dma.done.wait [#allocation5], 1280  }
  0x46   :  { %604 = vsyncadd [#allocation5], 4294966016 }
  0x47   :  { %605 = dma.done.wait [#allocation8], 1024  }
  0x48   :  { %606 = vsyncadd [#allocation8], 4294966272  ;;  %v613_v0 = vmov 0.0   ;;  %vm614_vm0 = vmmov 0   ;;  %v495_v1 = vld [vmem:[#allocation4] sm:$0xff]   ;;  %v496_v2 = vld [vmem:[#allocation4 + $0x8] sm:$0xff]  }
  0x49   :  { %439 = vmatprep.subr.bf16.mxu0 %v613_v0  ;;  %443 = vmatprep.mubr.msk.bf16.mxu0 %vm614_vm0, %v613_v0  ;;  %v77_v3 = vld [vmem:[#allocation2] sm:$0xff]  ;;  %v497_v4 = vld [vmem:[#allocation6] sm:$0xff]   ;;  %vm100_vm1 = vcmask 261120   ;;  %v499_v7 = vld [vmem:[#allocation6 + $0x10] sm:$0xff]   ;;  %vm385_vm2 = vcmask 7168  }
  0x4a   :  { %447 = vmatprep.subr.bf16.mxu1 %v613_v0  ;;  %463 = vmatprep.mubr.msk.bf16.mxu1 %vm614_vm0, %v613_v0  ;;  %v78_v5 = vpack.c.bf16 %v77_v3, %v77_v3  ;;  %v498_v6 = vld [vmem:[#allocation6 + $0x8] sm:$0xff]   ;;  %v500_v8 = vld [vmem:[#allocation6 + $0x18] sm:$0xff]   ;;  %v501_v9 = vld [vmem:[#allocation6 + $0x20] sm:$0xff]  }
  0x4b   :  { %440 = vmatpush3.bf16.msra.mxu0 %v495_v1  ;;  %448 = vmatpush3.bf16.msra.mxu1 %v497_v4  ;;  %v502_v10 = vld [vmem:[#allocation6 + $0x28] sm:$0xff]   ;;  %v503_v11 = vld [vmem:[#allocation6 + $0x30] sm:$0xff]   ;;  %v504_v12 = vld [vmem:[#allocation6 + $0x38] sm:$0xff]  }
  0x4c   :  { %441 = vmatprep.subr.bf16.mxu0 %v613_v0  ;;  %449 = vmatprep.subr.bf16.mxu1 %v613_v0  ;;  %v505_v13 = vld [vmem:[#allocation7] sm:$0xff]   ;;  %v506_v14 = vld [vmem:[#allocation7 + $0x8] sm:$0xff]   ;;  %v507_v15 = vld [vmem:[#allocation7 + $0x10] sm:$0xff]  }
  0x4d   :  { %v508_v16 = vld [vmem:[#allocation7 + $0x18] sm:$0xff]   ;;  %v509_v17 = vld [vmem:[#allocation7 + $0x20] sm:$0xff]   ;;  %v510_v18 = vld [vmem:[#allocation7 + $0x28] sm:$0xff]  }
  0x4e   :  { %v394_v19 = vld [vmem:[%s754_s5] ss:$0 sm:$0xff]  ;;  %v511_v27 = vld [vmem:[#allocation7 + $0x30] sm:$0xff]   ;;  %v512_v28 = vld [vmem:[#allocation7 + $0x38] sm:$0xff]  }
  0x4f   :  { %442 = vmatpush3.bf16.msra.mxu0 %v496_v2  ;;  %450 = vmatpush3.bf16.msra.mxu1 %v498_v6  ;;  %v398_v29 = vld [vmem:[%s754_s5 + $0x1] ss:$0 sm:$0xff]  ;;  %v407_v37 = vld [vmem:[%s754_s5 + $0x2] ss:$0 sm:$0xff]  ;;  %v416_v45 = vld [vmem:[%s753_s4] ss:$0 sm:$0xff] }
  0x50   :  { %467 = vmatprep.subr.bf16.mxu0 %v613_v0  ;;  %451 = vmatprep.subr.bf16.mxu1 %v613_v0  ;;  %v417_v48 = vld [vmem:[%s754_s5 + $0x3] ss:$0 sm:$0xff] }
  0x52   :  { %444 = vmatmul.mubr.msk.bf16.vlgmr.msra.gmra.mrb[0].mxu0 %vm100_vm1, %v78_v5 }
  0x53   :  { %483 = vmatprep.mubr.msk.bf16.mxu0 %vm614_vm0, %v613_v0  ;;  %452 = vmatpush3.bf16.msra.mxu1 %v499_v7 }
  0x54   :  { %453 = vmatprep.subr.bf16.mxu1 %v613_v0  ;;  %468 = vmatpush3.bf16.msra.mxu0 %v505_v13 }
  0x55   :  { %469 = vmatprep.subr.bf16.mxu0 %v613_v0 }
  0x57   :  { %454 = vmatpush3.bf16.msra.mxu1 %v500_v8 }
  0x58   :  { %455 = vmatprep.subr.bf16.mxu1 %v613_v0  ;;  %470 = vmatpush3.bf16.msra.mxu0 %v506_v14 }
  0x59   :  { %471 = vmatprep.subr.bf16.mxu0 %v613_v0 }
  0x5b   :  { %456 = vmatpush3.bf16.msra.mxu1 %v501_v9 }
  0x5c   :  { %457 = vmatprep.subr.bf16.mxu1 %v613_v0  ;;  %472 = vmatpush3.bf16.msra.mxu0 %v507_v15 }
  0x5d   :  { %473 = vmatprep.subr.bf16.mxu0 %v613_v0 }
  0x5f   :  { %458 = vmatpush3.bf16.msra.mxu1 %v502_v10 }
  0x60   :  { %459 = vmatprep.subr.bf16.mxu1 %v613_v0  ;;  %474 = vmatpush3.bf16.msra.mxu0 %v508_v16 }
  0x61   :  { %475 = vmatprep.subr.bf16.mxu0 %v613_v0 }
  0x63   :  { %460 = vmatpush3.bf16.msra.mxu1 %v503_v11 }
  0x64   :  { %461 = vmatprep.subr.bf16.mxu1 %v613_v0  ;;  %476 = vmatpush3.bf16.msra.mxu0 %v509_v17 }
  0x65   :  { %477 = vmatprep.subr.bf16.mxu0 %v613_v0 }
  0x67   :  { %462 = vmatpush3.bf16.msra.mxu1 %v504_v12 }
  0x68   :  { %478 = vmatpush3.bf16.msra.mxu0 %v510_v18 }
  0x69   :  { %479 = vmatprep.subr.bf16.mxu0 %v613_v0 }
  0x6c   :  { %480 = vmatpush3.bf16.msra.mxu0 %v511_v27 }
  0x6d   :  { %481 = vmatprep.subr.bf16.mxu0 %v613_v0 }
  0x70   :  { %482 = vmatpush3.bf16.msra.mxu0 %v512_v28 }
 0x125   :  { %v138_v20 = vpop.f32.mrb[0].mxu0 }
 0x126   :  { %v139_v21 = vadd.f32 %v394_v19, %v138_v20  ;;  %v445_v22 = vpop.f32.mrb[1].mxu0 }
 0x127   :  { %v141_v23 = vpop.f32.mrb[2].mxu0 }
 0x128   :  { %v144_v24 = vmax.f32 %v139_v21, 0.0  ;;  %v446_v25 = vpop.f32.mrb[3].mxu0 }
 0x12a   :  { %v145_v26 = vpack.c.bf16 %v144_v24, %v144_v24 }
 0x12c   :  { %464 = vmatmul.mubr.bf16.vlgmr.msra.gmra.mrb[0].mxu1 %v145_v26 }
 0x1ff   :  { %v249_v30 = vpop.f32.mrb[0].mxu1 }
 0x200   :  { %v250_v31 = vadd.f32 %v398_v29, %v249_v30  ;;  %v465_v32 = vpop.f32.mrb[1].mxu1 }
 0x201   :  { %v252_v33 = vpop.f32.mrb[2].mxu1 }
 0x202   :  { %v255_v34 = vmax.f32 %v250_v31, 0.0  ;;  %v466_v35 = vpop.f32.mrb[3].mxu1 }
 0x204   :  { %v256_v36 = vpack.c.bf16 %v255_v34, %v255_v34 }
 0x206   :  { %484 = vmatmul.mubr.bf16.vlgmr.msra.gmra.mrb[4].mxu0 %v256_v36 }
 0x2d9   :  { %v360_v38 = vpop.f32.mrb[4].mxu0 }
 0x2da   :  { %v361_v39 = vadd.f32 %v407_v37, %v360_v38  ;;  %v485_v40 = vpop.f32.mrb[5].mxu0 }
 0x2db   :  { %v363_v41 = vpop.f32.mrb[6].mxu0 }
 0x2dc   :  { %v366_v42 = vmax.f32 %v361_v39, 0.0  ;;  %v486_v43 = vpop.f32.mrb[7].mxu0 }
 0x2de   :  { %v367_v44 = vpack.c.bf16 %v366_v42, %v366_v42 }
 0x2e0   :  { %v368_v46 = vunpack.c.l.bf16 %v367_v44 }
 0x2e2   :  { %v376_v47 = vmul.f32 %v416_v45, %v368_v46 }
 0x2e4   :  { %377 = vadd.xlane.f32.xlu0 %v376_v47 }
 0x371   :  { %v378_v49 = vpop.xlane.xlu0 %377 }
 0x372   :  { %v384_v50 = vadd.f32 %v417_v48, %v378_v49 }
 0x374   :  { %386 = vst.msk [vmem:[%s755_s6] sm:$0xff] %vm385_vm2, %v384_v50 }
 0x375   :  { %391 = vsyncpa [#allocation3], 1 }
 0x376   :  { %392 = vsyncpa [#allocation5], 1 }
 0x377   :  { %393 = vsyncpa [#allocation8], 1 }

// kernel: tpu_custom_call.1
= control target key start
LH: loop header
LB: loop body
LE: loop exit
PB: predicated region body
PF: predicated region fallthrough
CT: control target
= control target key end

     0   :  { %11 = vsyncpa [#allocation3], 0  ;;  %s749_s0 = inlined_call_operand.hbm [shape: f32[8,32], index: 0, kind: input, shape index: {}]   ;;  %s750_s1 = inlined_call_operand.hbm [shape: bf16[32,128], index: 1, kind: input, shape index: {}]   ;;  %s751_s2 = inlined_call_operand.hbm [shape: bf16[128,128], index: 2, kind: input, shape index: {}]   ;;  %s752_s3 = inlined_call_operand.hbm [shape: bf16[128,128], index: 3, kind: input, shape index: {}]   ;;  %s753_s4 = inlined_call_operand.vmem [shape: f32[1,128], index: 4, kind: input, shape index: {}]   ;;  %s754_s5 = inlined_call_operand.vmem [shape: f32[4,128], index: 5, kind: input, shape index: {}]   ;;  %s755_s6 = inlined_call_operand.vmem [shape: f32[8,1], index: 6, kind: output, shape index: {}]  }
   0x1   :  { %12 = vsyncpa [#allocation5], 0 }
   0x2   :  { %13 = vsyncpa [#allocation8], 0  ;;  %s607_s21 = smov [#allocation4]   ;;  %s513_s25 = scalar_lea.hbm %s750_s1, 256 }
   0x3   :  { %s29_s22 = sshll.u32 %s607_s21, 4  ;;  %p514_p0 = scmp.ne.s32.totalorder %s750_s1, %s513_s25  ;;  %s30_s22 = int_to_ptr.vmem [resolvable:$true] %s29_s22 }
   0x4   :  { %p517_p1 = scmp.lt.u32.totalorder %s513_s25, %s750_s1 }
   0x6   :  { %p519_p2 = pnand %p517_p1, %p514_p0 }
   0x8   :  { %522 = shalt.err (!%p519_p2)
}
   0x9   :  { %s523_s30 = scalar_lea.vmem %s30_s22, 256  ;;  %p528_p4 = scmp.lt.s32.totalorder %s30_s22, %s30_s22 }
   0xa   :  { %p524_p3 = scmp.ne.s32.totalorder %s30_s22, %s523_s30  ;;  %p529_p5 = scmp.lt.s32.totalorder %s523_s30, %s523_s30 }
   0xc   :  { %p530_p6 = por %p529_p5, %p528_p4 }
   0xe   :  { %p531_p7 = pnand %p530_p6, %p524_p3 }
  0x10   :  { %534 = shalt.err (!%p531_p7)
}
  0x11   :  { %s608_s7 = smov 64   ;;  %s609_s8 = smov 4  }
  0x12   :  { %35 = dma.hbm_to_vmem [thread:$0]  %s750_s1, 256, %s30_s22, [#allocation5], %s608_s7, %s608_s7, %s609_s8  }
  0x13   :  { %s610_s11 = smov [#allocation2]   ;;  %s611_s13 = smov [#allocation6]  }
  0x14   :  { %s20_s12 = sshll.u32 %s610_s11, 4  ;;  %s41_s14 = sshll.u32 %s611_s13, 4  ;;  %s21_s12 = int_to_ptr.vmem [resolvable:$true] %s20_s12  ;;  %s42_s14 = int_to_ptr.vmem [resolvable:$true] %s41_s14 }
  0x15   :  { %s535_s17 = scalar_lea.hbm %s749_s0, 128 }
  0x16   :  { %p536_p8 = scmp.ne.s32.totalorder %s749_s0, %s535_s17  ;;  %p539_p9 = scmp.lt.u32.totalorder %s535_s17, %s749_s0 }
  0x18   :  { %p541_p10 = pnand %p539_p9, %p536_p8 }
  0x1a   :  { %544 = shalt.err (!%p541_p10)
}
  0x1b   :  { %s545_s1 = scalar_lea.vmem %s21_s12, 128  ;;  %p550_p12 = scmp.lt.s32.totalorder %s21_s12, %s21_s12 }
  0x1c   :  { %p546_p11 = scmp.ne.s32.totalorder %s21_s12, %s545_s1  ;;  %p551_p13 = scmp.lt.s32.totalorder %s545_s1, %s545_s1 }
  0x1e   :  { %p552_p0 = por %p551_p13, %p550_p12 }
  0x20   :  { %p553_p1 = pnand %p552_p0, %p546_p11 }
  0x22   :  { %556 = shalt.err (!%p553_p1)
}
  0x23   :  { %23 = dma.hbm_to_vmem [thread:$0]  %s749_s0, 128, %s21_s12, [#allocation3]  }
  0x24   :  { %s557_s26 = scalar_lea.hbm %s751_s2, 1024 }
  0x25   :  { %p558_p2 = scmp.ne.s32.totalorder %s751_s2, %s557_s26  ;;  %p561_p3 = scmp.lt.u32.totalorder %s557_s26, %s751_s2 }
  0x27   :  { %p563_p4 = pnand %p561_p3, %p558_p2 }
  0x29   :  { %566 = shalt.err (!%p563_p4)
}
  0x2a   :  { %s567_s9 = scalar_lea.vmem %s42_s14, 1024  ;;  %p572_p6 = scmp.lt.s32.totalorder %s42_s14, %s42_s14 }
  0x2b   :  { %p568_p5 = scmp.ne.s32.totalorder %s42_s14, %s567_s9  ;;  %p573_p7 = scmp.lt.s32.totalorder %s567_s9, %s567_s9 }
  0x2d   :  { %p574_p8 = por %p573_p7, %p572_p6 }
  0x2f   :  { %p575_p9 = pnand %p574_p8, %p568_p5 }
  0x31   :  { %578 = shalt.err (!%p575_p9)
}
  0x32   :  { %47 = dma.hbm_to_vmem [thread:$0]  %s751_s2, 1024, %s42_s14, [#allocation5], %s608_s7, %s608_s7, %s609_s8  }
  0x33   :  { %s612_s11 = smov [#allocation7]   ;;  %s579_s16 = scalar_lea.hbm %s752_s3, 1024 }
  0x34   :  { %s53_s12 = sshll.u32 %s612_s11, 4  ;;  %p580_p10 = scmp.ne.s32.totalorder %s752_s3, %s579_s16  ;;  %s54_s12 = int_to_ptr.vmem [resolvable:$true] %s53_s12 }
  0x35   :  { %p583_p11 = scmp.lt.u32.totalorder %s579_s16, %s752_s3 }
  0x37   :  { %p585_p12 = pnand %p583_p11, %p580_p10 }
  0x39   :  { %588 = shalt.err (!%p585_p12)
}
  0x3a   :  { %s589_s21 = scalar_lea.vmem %s54_s12, 1024  ;;  %p594_p0 = scmp.lt.s32.totalorder %s54_s12, %s54_s12 }
  0x3b   :  { %p590_p13 = scmp.ne.s32.totalorder %s54_s12, %s589_s21  ;;  %p595_p1 = scmp.lt.s32.totalorder %s589_s21, %s589_s21 }
  0x3d   :  { %p596_p2 = por %p595_p1, %p594_p0 }
  0x3f   :  { %p597_p3 = pnand %p596_p2, %p590_p13 }
  0x41   :  { %600 = shalt.err (!%p597_p3)
}
  0x42   :  { %59 = dma.hbm_to_vmem [thread:$0]  %s752_s3, 1024, %s54_s12, [#allocation8], %s608_s7, %s608_s7, %s609_s8  }
  0x43   :  { %601 = dma.done.wait [#allocation3], 128  }
  0x44   :  { %602 = vsyncadd [#allocation3], 4294967168 }
  0x45   :  { %603 = dma.done.wait [#allocation5], 1280  }
  0x46   :  { %604 = vsyncadd [#allocation5], 4294966016 }
  0x47   :  { %605 = dma.done.wait [#allocation8], 1024  }
  0x48   :  { %606 = vsyncadd [#allocation8], 4294966272  ;;  %v613_v0 = vmov 0.0   ;;  %vm614_vm0 = vmmov 0   ;;  %v495_v1 = vld [vmem:[#allocation4] sm:$0xff]   ;;  %v496_v2 = vld [vmem:[#allocation4 + $0x8] sm:$0xff]  }
  0x49   :  { %439 = vmatprep.subr.bf16.mxu0 %v613_v0  ;;  %443 = vmatprep.mubr.msk.bf16.mxu0 %vm614_vm0, %v613_v0  ;;  %v77_v3 = vld [vmem:[#allocation2] sm:$0xff]  ;;  %v497_v4 = vld [vmem:[#allocation6] sm:$0xff]   ;;  %vm100_vm1 = vcmask 261120   ;;  %v499_v7 = vld [vmem:[#allocation6 + $0x10] sm:$0xff]   ;;  %vm385_vm2 = vcmask 7168  }
  0x4a   :  { %447 = vmatprep.subr.bf16.mxu1 %v613_v0  ;;  %463 = vmatprep.mubr.msk.bf16.mxu1 %vm614_vm0, %v613_v0  ;;  %v78_v5 = vpack.c.bf16 %v77_v3, %v77_v3  ;;  %v498_v6 = vld [vmem:[#allocation6 + $0x8] sm:$0xff]   ;;  %v500_v8 = vld [vmem:[#allocation6 + $0x18] sm:$0xff]   ;;  %v501_v9 = vld [vmem:[#allocation6 + $0x20] sm:$0xff]  }
  0x4b   :  { %440 = vmatpush3.bf16.msra.mxu0 %v495_v1  ;;  %448 = vmatpush3.bf16.msra.mxu1 %v497_v4  ;;  %v502_v10 = vld [vmem:[#allocation6 + $0x28] sm:$0xff]   ;;  %v503_v11 = vld [vmem:[#allocation6 + $0x30] sm:$0xff]   ;;  %v504_v12 = vld [vmem:[#allocation6 + $0x38] sm:$0xff]  }
  0x4c   :  { %441 = vmatprep.subr.bf16.mxu0 %v613_v0  ;;  %449 = vmatprep.subr.bf16.mxu1 %v613_v0  ;;  %v505_v13 = vld [vmem:[#allocation7] sm:$0xff]   ;;  %v506_v14 = vld [vmem:[#allocation7 + $0x8] sm:$0xff]   ;;  %v507_v15 = vld [vmem:[#allocation7 + $0x10] sm:$0xff]  }
  0x4d   :  { %v508_v16 = vld [vmem:[#allocation7 + $0x18] sm:$0xff]   ;;  %v509_v17 = vld [vmem:[#allocation7 + $0x20] sm:$0xff]   ;;  %v510_v18 = vld [vmem:[#allocation7 + $0x28] sm:$0xff]  }
  0x4e   :  { %v394_v19 = vld [vmem:[%s754_s5] ss:$0 sm:$0xff]  ;;  %v511_v27 = vld [vmem:[#allocation7 + $0x30] sm:$0xff]   ;;  %v512_v28 = vld [vmem:[#allocation7 + $0x38] sm:$0xff]  }
  0x4f   :  { %442 = vmatpush3.bf16.msra.mxu0 %v496_v2  ;;  %450 = vmatpush3.bf16.msra.mxu1 %v498_v6  ;;  %v398_v29 = vld [vmem:[%s754_s5 + $0x1] ss:$0 sm:$0xff]  ;;  %v407_v37 = vld [vmem:[%s754_s5 + $0x2] ss:$0 sm:$0xff]  ;;  %v416_v45 = vld [vmem:[%s753_s4] ss:$0 sm:$0xff] }
  0x50   :  { %467 = vmatprep.subr.bf16.mxu0 %v613_v0  ;;  %451 = vmatprep.subr.bf16.mxu1 %v613_v0  ;;  %v417_v48 = vld [vmem:[%s754_s5 + $0x3] ss:$0 sm:$0xff] }
  0x52   :  { %444 = vmatmul.mubr.msk.bf16.vlgmr.msra.gmra.mrb[0].mxu0 %vm100_vm1, %v78_v5 }
  0x53   :  { %483 = vmatprep.mubr.msk.bf16.mxu0 %vm614_vm0, %v613_v0  ;;  %452 = vmatpush3.bf16.msra.mxu1 %v499_v7 }
  0x54   :  { %453 = vmatprep.subr.bf16.mxu1 %v613_v0  ;;  %468 = vmatpush3.bf16.msra.mxu0 %v505_v13 }
  0x55   :  { %469 = vmatprep.subr.bf16.mxu0 %v613_v0 }
  0x57   :  { %454 = vmatpush3.bf16.msra.mxu1 %v500_v8 }
  0x58   :  { %455 = vmatprep.subr.bf16.mxu1 %v613_v0  ;;  %470 = vmatpush3.bf16.msra.mxu0 %v506_v14 }
  0x59   :  { %471 = vmatprep.subr.bf16.mxu0 %v613_v0 }
  0x5b   :  { %456 = vmatpush3.bf16.msra.mxu1 %v501_v9 }
  0x5c   :  { %457 = vmatprep.subr.bf16.mxu1 %v613_v0  ;;  %472 = vmatpush3.bf16.msra.mxu0 %v507_v15 }
  0x5d   :  { %473 = vmatprep.subr.bf16.mxu0 %v613_v0 }
  0x5f   :  { %458 = vmatpush3.bf16.msra.mxu1 %v502_v10 }
  0x60   :  { %459 = vmatprep.subr.bf16.mxu1 %v613_v0  ;;  %474 = vmatpush3.bf16.msra.mxu0 %v508_v16 }
  0x61   :  { %475 = vmatprep.subr.bf16.mxu0 %v613_v0 }
  0x63   :  { %460 = vmatpush3.bf16.msra.mxu1 %v503_v11 }
  0x64   :  { %461 = vmatprep.subr.bf16.mxu1 %v613_v0  ;;  %476 = vmatpush3.bf16.msra.mxu0 %v509_v17 }
  0x65   :  { %477 = vmatprep.subr.bf16.mxu0 %v613_v0 }
  0x67   :  { %462 = vmatpush3.bf16.msra.mxu1 %v504_v12 }
  0x68   :  { %478 = vmatpush3.bf16.msra.mxu0 %v510_v18 }
  0x69   :  { %479 = vmatprep.subr.bf16.mxu0 %v613_v0 }
  0x6c   :  { %480 = vmatpush3.bf16.msra.mxu0 %v511_v27 }
  0x6d   :  { %481 = vmatprep.subr.bf16.mxu0 %v613_v0 }
  0x70   :  { %482 = vmatpush3.bf16.msra.mxu0 %v512_v28 }
 0x125   :  { %v138_v20 = vpop.f32.mrb[0].mxu0 }
 0x126   :  { %v139_v21 = vadd.f32 %v394_v19, %v138_v20  ;;  %v445_v22 = vpop.f32.mrb[1].mxu0 }
 0x127   :  { %v141_v23 = vpop.f32.mrb[2].mxu0 }
 0x128   :  { %v144_v24 = vmax.f32 %v139_v21, 0.0  ;;  %v446_v25 = vpop.f32.mrb[3].mxu0 }
 0x12a   :  { %v145_v26 = vpack.c.bf16 %v144_v24, %v144_v24 }
 0x12c   :  { %464 = vmatmul.mubr.bf16.vlgmr.msra.gmra.mrb[0].mxu1 %v145_v26 }
 0x1ff   :  { %v249_v30 = vpop.f32.mrb[0].mxu1 }
 0x200   :  { %v250_v31 = vadd.f32 %v398_v29, %v249_v30  ;;  %v465_v32 = vpop.f32.mrb[1].mxu1 }
 0x201   :  { %v252_v33 = vpop.f32.mrb[2].mxu1 }
 0x202   :  { %v255_v34 = vmax.f32 %v250_v31, 0.0  ;;  %v466_v35 = vpop.f32.mrb[3].mxu1 }
 0x204   :  { %v256_v36 = vpack.c.bf16 %v255_v34, %v255_v34 }
 0x206   :  { %484 = vmatmul.mubr.bf16.vlgmr.msra.gmra.mrb[4].mxu0 %v256_v36 }
 0x2d9   :  { %v360_v38 = vpop.f32.mrb[4].mxu0 }
 0x2da   :  { %v361_v39 = vadd.f32 %v407_v37, %v360_v38  ;;  %v485_v40 = vpop.f32.mrb[5].mxu0 }
 0x2db   :  { %v363_v41 = vpop.f32.mrb[6].mxu0 }
 0x2dc   :  { %v366_v42 = vmax.f32 %v361_v39, 0.0  ;;  %v486_v43 = vpop.f32.mrb[7].mxu0 }
 0x2de   :  { %v367_v44 = vpack.c.bf16 %v366_v42, %v366_v42 }
 0x2e0   :  { %v368_v46 = vunpack.c.l.bf16 %v367_v44 }
 0x2e2   :  { %v376_v47 = vmul.f32 %v416_v45, %v368_v46 }
 0x2e4   :  { %377 = vadd.xlane.f32.xlu0 %v376_v47 }
 0x371   :  { %v378_v49 = vpop.xlane.xlu0 %377 }
 0x372   :  { %v384_v50 = vadd.f32 %v417_v48, %v378_v49 }
 0x374   :  { %386 = vst.msk [vmem:[%s755_s6] sm:$0xff] %vm385_vm2, %v384_v50 }
 0x375   :  { %391 = vsyncpa [#allocation3], 1 }
 0x376   :  { %392 = vsyncpa [#allocation5], 1 }
 0x377   :  { %393 = vsyncpa [#allocation8], 1 }

</bundles_post_ra>
